<compile_context>
chip_gen: v6e
topology: v6e:2x2x1
jax: 0.10.0
libtpu: 0.0.40
codegen_flags: <defaults>
</compile_context>

<pallas_src>
import functools

import jax
import jax.numpy as jnp
from jax.experimental import pallas as pl
from jax.experimental.pallas import tpu as pltpu


_VMEM_LIMIT_BYTES = 64 * 1024 * 1024
_X_TILE_BUDGET_BYTES = 12 * 1024 * 1024  # 2x(in)+2x(out) double-buffered x tiles


def _round_up(x, m):
    return ((x + m - 1) // m) * m


def _pick_tiles(B, C, N):
    """Choose (block_b, tile_n, n_pad)."""
    # Batch-block: pack several small-C examples per grid step, but keep at least
    # two parallel grid steps when B >= 2 so both v7x TensorCores get work.
    if C >= 128:
        block_b = 1
    else:
        block_b = max(1, min(B, 128 // C))
        if B >= 2:
            block_b = min(block_b, max(1, B // 2))
    while B % block_b != 0:
        block_b -= 1

    # N-tile: multiple of 128 (lane-dense), sized so the four double-buffered
    # (block_b, C, tile_n) f32 tiles of pass 2 stay under the budget.
    tile_n = max(128, (_X_TILE_BUDGET_BYTES // (16 * block_b * C)) // 128 * 128)
    tile_n = min(tile_n, _round_up(N, 128))
    n_pad = _round_up(N, tile_n)
    return block_b, tile_n, n_pad


# --------------------------------------------------------------------------- #
# Pass 1: energy accumulation over N-tiles + in-place softmax -> attention.
# --------------------------------------------------------------------------- #
def _energy_softmax_kernel(x_ref, attn_ref):
    # x_ref:    (block_b, C, tile_n)
    # attn_ref: (block_b, C, C)  f32, resident across the t ("arbitrary") axis.
    t = pl.program_id(1)

    @pl.when(t == 0)
    def _init():
        attn_ref[...] = jnp.zeros_like(attn_ref)

    x = x_ref[...]
    # energy += x @ x^T (contract over the spatial axis), batched over block_b.
    attn_ref[...] += jnp.einsum(
        "bcn,bdn->bcd", x, x, preferred_element_type=jnp.float32
    )

    @pl.when(t == pl.num_programs(1) - 1)
    def _finalize():
        energy = attn_ref[...]
        # softmax(rowmax(E) - E) == exp(rowmin(E) - E) / sum(...)
        # (stable: exponents are <= 0), one reduce + one subtract fewer.
        e = jnp.exp(jnp.min(energy, axis=-1, keepdims=True) - energy)
        denom = jnp.sum(e, axis=-1, keepdims=True)
        attn_ref[...] = e * pl.reciprocal(denom, approx=True)


# --------------------------------------------------------------------------- #
# Pass 2: out_tile = gamma * (attention @ x_tile) + x_tile.
# --------------------------------------------------------------------------- #
def _apply_kernel(gamma_ref, attn_ref, x_ref, out_ref):
    # gamma_ref: (1,) in SMEM; attn_ref: (block_b, C, C) f32;
    # x_ref/out_ref: (block_b, C, tile_n)
    x = x_ref[...]
    av = jnp.einsum(
        "bcd,bdn->bcn", attn_ref[...], x, preferred_element_type=jnp.float32
    )
    gamma = gamma_ref[0].astype(jnp.float32)
    out_ref[...] = (gamma * av + x.astype(jnp.float32)).astype(out_ref.dtype)


# --------------------------------------------------------------------------- #
# Wrapper.
# --------------------------------------------------------------------------- #
@functools.partial(jax.jit, static_argnames=())
def cam_module(x, gamma):
    """x: (B, C, H, W), gamma: (1,) -> (B, C, H, W)."""
    B, C, H, W = x.shape
    N = H * W
    block_b, tile_n, n_pad = _pick_tiles(B, C, N)

    x_flat = x.reshape(B, C, N)
    if n_pad != N:
        # Zero padding along N is exact: adds 0 to energy; padded output columns
        # are sliced off below. Keeps the output last dim lane-dense.
        x_flat = jnp.pad(x_flat, ((0, 0), (0, 0), (0, n_pad - N)))

    nb = B // block_b
    nt = n_pad // tile_n

    # Pass 1: attention (B, C, C) in f32.
    attention = pl.pallas_call(
        _energy_softmax_kernel,
        out_shape=jax.ShapeDtypeStruct((B, C, C), jnp.float32),
        grid_spec=pltpu.PrefetchScalarGridSpec(
            num_scalar_prefetch=0,
            grid=(nb, nt),
            in_specs=[
                pl.BlockSpec((block_b, C, tile_n), lambda b, t: (b, 0, t)),
            ],
            out_specs=pl.BlockSpec((block_b, C, C), lambda b, t: (b, 0, 0)),
        ),
        compiler_params=pltpu.CompilerParams(
            dimension_semantics=("parallel", "arbitrary"),
            vmem_limit_bytes=_VMEM_LIMIT_BYTES,
        ),
    )(x_flat)

    # Pass 2: stream N-tiles, emit gamma * (attn @ x) + x. Alias x -> out
    # (each output tile depends only on the same-step input tile).
    out_flat = pl.pallas_call(
        _apply_kernel,
        out_shape=jax.ShapeDtypeStruct((B, C, n_pad), x.dtype),
        grid_spec=pltpu.PrefetchScalarGridSpec(
            num_scalar_prefetch=0,
            grid=(nb, nt),
            in_specs=[
                pl.BlockSpec(memory_space=pltpu.MemorySpace.SMEM),           # gamma
                pl.BlockSpec((block_b, C, C), lambda b, t: (b, 0, 0)),       # attention
                pl.BlockSpec((block_b, C, tile_n), lambda b, t: (b, 0, t)),  # x tile
            ],
            out_specs=pl.BlockSpec((block_b, C, tile_n), lambda b, t: (b, 0, t)),
        ),
        compiler_params=pltpu.CompilerParams(
            dimension_semantics=("parallel", "parallel"),
            vmem_limit_bytes=_VMEM_LIMIT_BYTES,
        ),
        input_output_aliases={2: 0},
    )(gamma, attention, x_flat)

    return out_flat[:, :, :N].reshape(B, C, H, W)


def cam_reference(x, gamma):
    """Pure-JAX reference mirroring the PyTorch forward."""
    B, C, H, W = x.shape
    xf = x.reshape(B, C, -1)
    energy = jnp.einsum("bcn,bdn->bcd", xf, xf)
    energy_new = jnp.max(energy, axis=-1, keepdims=True) - energy
    attention = jax.nn.softmax(energy_new, axis=-1)
    out = jnp.einsum("bcd,bdn->bcn", attention, xf).reshape(B, C, H, W)
    return gamma[0] * out + x


if __name__ == "__main__":
    key = jax.random.PRNGKey(0)
    B, C, H, W = 2, 4, 16, 16
    x = jax.random.normal(key, (B, C, H, W), dtype=jnp.float32)

    # Parameter init per module __init__: gamma = zeros(1)
    gamma = jnp.zeros((1,), dtype=jnp.float32)

    out = jax.block_until_ready(cam_module(x, gamma))
    ref = cam_reference(x, gamma)
    assert out.shape == (B, C, H, W)
    assert jnp.allclose(out, ref, atol=1e-5, rtol=1e-5), "mismatch vs reference (gamma=0)"

    # Exercise the attention path with a nonzero gamma. Tolerance is loosened a
    # bit because the softmax denominator uses the approximate EUP reciprocal.
    gamma2 = jnp.array([0.5], dtype=jnp.float32)
    out2 = jax.block_until_ready(cam_module(x, gamma2))
    ref2 = cam_reference(x, gamma2)
    assert jnp.allclose(out2, ref2, atol=1e-2, rtol=1e-2), "mismatch vs reference (gamma=0.5)"

    print("KERNEL_OK")
</pallas_src>

<mosaic_0001>
module attributes {stable_mosaic.version = 11 : i64} {
  func.func @_apply_kernel(%arg0: i32, %arg1: i32, %arg2: memref<1xf32, #tpu.memory_space<smem>>, %arg3: memref<1x4x4xf32, #tpu.memory_space<vmem>>, %arg4: memref<1x4x256xf32, #tpu.memory_space<vmem>>, %arg5: memref<1x4x256xf32, #tpu.memory_space<vmem>>) attributes {dimension_semantics = [#tpu.dimension_semantics<parallel>, #tpu.dimension_semantics<parallel>], iteration_bounds = array<i64: 2, 1>, scalar_prefetch = 0 : i64, scratch_operands = 0 : i64, tpu.core_type = #tpu.core_type<tc>, window_params = [{transform_indices = @transform_0, window_bounds = array<i64: 1>}, {transform_indices = @transform_1, window_bounds = array<i64: 1, 4, 4>}, {transform_indices = @transform_2, window_bounds = array<i64: 1, 4, 256>}, {transform_indices = @transform_3, window_bounds = array<i64: 1, 4, 256>}]} {
    %c0 = arith.constant 0 : index
    %c0_0 = arith.constant 0 : index
    %c0_1 = arith.constant 0 : index
    %0 = vector.load %arg4[%c0, %c0_0, %c0_1] : memref<1x4x256xf32, #tpu.memory_space<vmem>>, vector<1x4x256xf32>
    %c0_2 = arith.constant 0 : index
    %c0_3 = arith.constant 0 : index
    %c0_4 = arith.constant 0 : index
    %1 = vector.load %arg3[%c0_2, %c0_3, %c0_4] : memref<1x4x4xf32, #tpu.memory_space<vmem>>, vector<1x4x4xf32>
    "tpu.trace_start"() <{level = 10 : i32, message = "bcd,bdn->bcn"}> : () -> ()
    %cst = arith.constant dense<0.000000e+00> : vector<1x4x256xf32>
    %2 = tpu.matmul %1, %0, %cst {dimension_numbers = #tpu.dot_dimension_numbers<[2], [1], [1], [2], [0, 0, 0, 1, 1, 2], [0], [0]>} : vector<1x4x4xf32>, vector<1x4x256xf32>, vector<1x4x256xf32> -> vector<1x4x256xf32>
    "tpu.trace_stop"() : () -> ()
    %c0_5 = arith.constant 0 : index
    %3 = memref.load %arg2[%c0_5] : memref<1xf32, #tpu.memory_space<smem>>
    %4 = vector.broadcast %3 : f32 to vector<1x4x256xf32>
    %5 = arith.mulf %4, %2 : vector<1x4x256xf32>
    %6 = arith.addf %5, %0 : vector<1x4x256xf32>
    %c0_6 = arith.constant 0 : index
    %c0_7 = arith.constant 0 : index
    %c0_8 = arith.constant 0 : index
    %7 = vector.load %arg5[%c0_6, %c0_7, %c0_8] : memref<1x4x256xf32, #tpu.memory_space<vmem>>, vector<1x4x256xf32>
    tpu.vector_store %arg5[%c0_6, %c0_7, %c0_8], %6 {strides = array<i32>} : memref<1x4x256xf32, #tpu.memory_space<vmem>>, vector<1x4x256xf32>,
    return
  }
  func.func @transform_0(%arg0: i32, %arg1: i32) -> i32 {
    %c0_i32 = arith.constant 0 : i32
    %c0_i32_0 = arith.constant 0 : i32
    return %c0_i32 : i32
  }
  func.func @transform_1(%arg0: i32, %arg1: i32) -> (i32, i32, i32) {
    %c0_i32 = arith.constant 0 : i32
    %c0_i32_0 = arith.constant 0 : i32
    %c0_i32_1 = arith.constant 0 : i32
    return %arg0, %c0_i32, %c0_i32_0 : i32, i32, i32
  }
  func.func @transform_2(%arg0: i32, %arg1: i32) -> (i32, i32, i32) {
    %c0_i32 = arith.constant 0 : i32
    %c0_i32_0 = arith.constant 0 : i32
    return %arg0, %c0_i32, %arg1 : i32, i32, i32
  }
  func.func @transform_3(%arg0: i32, %arg1: i32) -> (i32, i32, i32) {
    %c0_i32 = arith.constant 0 : i32
    %c0_i32_0 = arith.constant 0 : i32
    return %arg0, %c0_i32, %arg1 : i32, i32, i32
  }
}

module attributes {stable_mosaic.version = 11 : i64} {
  func.func @_energy_softmax_kernel(%arg0: i32, %arg1: i32, %arg2: memref<1x4x256xf32, #tpu.memory_space<vmem>>, %arg3: memref<1x4x4xf32, #tpu.memory_space<vmem>>) attributes {dimension_semantics = [#tpu.dimension_semantics<parallel>, #tpu.dimension_semantics<arbitrary>], iteration_bounds = array<i64: 2, 1>, scalar_prefetch = 0 : i64, scratch_operands = 0 : i64, tpu.core_type = #tpu.core_type<tc>, window_params = [{transform_indices = @transform_0, window_bounds = array<i64: 1, 4, 256>}, {transform_indices = @transform_1, window_bounds = array<i64: 1, 4, 4>}]} {
    %c0_i32 = arith.constant 0 : i32
    %0 = arith.cmpi eq, %arg1, %c0_i32 : i32
    %1 = arith.extui %0 : i1 to i32
    %c0_i32_0 = arith.constant 0 : i32
    %2 = arith.cmpi ne, %1, %c0_i32_0 : i32
    scf.if %2 {
      %cst_11 = arith.constant 0.000000e+00 : f32
      %11 = vector.broadcast %cst_11 : f32 to vector<1x4x4xf32>
      %c0_12 = arith.constant 0 : index
      %c0_13 = arith.constant 0 : index
      %c0_14 = arith.constant 0 : index
      %12 = vector.load %arg3[%c0_12, %c0_13, %c0_14] : memref<1x4x4xf32, #tpu.memory_space<vmem>>, vector<1x4x4xf32>
      tpu.vector_store %arg3[%c0_12, %c0_13, %c0_14], %11 {strides = array<i32>} : memref<1x4x4xf32, #tpu.memory_space<vmem>>, vector<1x4x4xf32>,
    } else {
    }
    %c0 = arith.constant 0 : index
    %c0_1 = arith.constant 0 : index
    %c0_2 = arith.constant 0 : index
    %3 = vector.load %arg2[%c0, %c0_1, %c0_2] : memref<1x4x256xf32, #tpu.memory_space<vmem>>, vector<1x4x256xf32>
    %c0_3 = arith.constant 0 : index
    %c0_4 = arith.constant 0 : index
    %c0_5 = arith.constant 0 : index
    %4 = vector.load %arg3[%c0_3, %c0_4, %c0_5] : memref<1x4x4xf32, #tpu.memory_space<vmem>>, vector<1x4x4xf32>
    "tpu.trace_start"() <{level = 10 : i32, message = "bcn,bdn->bcd"}> : () -> ()
    %cst = arith.constant dense<0.000000e+00> : vector<1x4x4xf32>
    %5 = tpu.matmul %3, %3, %cst {dimension_numbers = #tpu.dot_dimension_numbers<[2], [2], [1], [1], [0, 0, 0, 1, 1, 1], [0], [0]>} : vector<1x4x256xf32>, vector<1x4x256xf32>, vector<1x4x4xf32> -> vector<1x4x4xf32>
    "tpu.trace_stop"() : () -> ()
    %6 = arith.addf %4, %5 : vector<1x4x4xf32>
    %c0_6 = arith.constant 0 : index
    %c0_7 = arith.constant 0 : index
    %c0_8 = arith.constant 0 : index
    %7 = vector.load %arg3[%c0_6, %c0_7, %c0_8] : memref<1x4x4xf32, #tpu.memory_space<vmem>>, vector<1x4x4xf32>
    tpu.vector_store %arg3[%c0_6, %c0_7, %c0_8], %6 {strides = array<i32>} : memref<1x4x4xf32, #tpu.memory_space<vmem>>, vector<1x4x4xf32>,
    %c0_i32_9 = arith.constant 0 : i32
    %8 = arith.cmpi eq, %arg1, %c0_i32_9 : i32
    %9 = arith.extui %8 : i1 to i32
    %c0_i32_10 = arith.constant 0 : i32
    %10 = arith.cmpi ne, %9, %c0_i32_10 : i32
    scf.if %10 {
      %c0_11 = arith.constant 0 : index
      %c0_12 = arith.constant 0 : index
      %c0_13 = arith.constant 0 : index
      %11 = vector.load %arg3[%c0_11, %c0_12, %c0_13] : memref<1x4x4xf32, #tpu.memory_space<vmem>>, vector<1x4x4xf32>
      %cst_14 = arith.constant dense<0x7F800000> : vector<1x4xf32>
      %12 = vector.multi_reduction <minimumf>, %11, %cst_14 [2] : vector<1x4x4xf32> to vector<1x4xf32>
      %13 = vector.shape_cast %12 : vector<1x4xf32> to vector<1x4x1xf32>
      %14 = vector.broadcast %13 : vector<1x4x1xf32> to vector<1x4x4xf32>
      %15 = arith.subf %14, %11 : vector<1x4x4xf32>
      %16 = math.exp %15 : vector<1x4x4xf32>
      %cst_15 = arith.constant dense<0.000000e+00> : vector<1x4xf32>
      %17 = vector.multi_reduction <add>, %16, %cst_15 [2] : vector<1x4x4xf32> to vector<1x4xf32>
      %18 = vector.shape_cast %17 : vector<1x4xf32> to vector<1x4x1xf32>
      %19 = tpu.reciprocal %18 {approx = true} : vector<1x4x1xf32> -> vector<1x4x1xf32>
      %20 = vector.broadcast %19 : vector<1x4x1xf32> to vector<1x4x4xf32>
      %21 = arith.mulf %16, %20 : vector<1x4x4xf32>
      %c0_16 = arith.constant 0 : index
      %c0_17 = arith.constant 0 : index
      %c0_18 = arith.constant 0 : index
      %22 = vector.load %arg3[%c0_16, %c0_17, %c0_18] : memref<1x4x4xf32, #tpu.memory_space<vmem>>, vector<1x4x4xf32>
      tpu.vector_store %arg3[%c0_16, %c0_17, %c0_18], %21 {strides = array<i32>} : memref<1x4x4xf32, #tpu.memory_space<vmem>>, vector<1x4x4xf32>,
    } else {
    }
    return
  }
  func.func @transform_0(%arg0: i32, %arg1: i32) -> (i32, i32, i32) {
    %c0_i32 = arith.constant 0 : i32
    %c0_i32_0 = arith.constant 0 : i32
    return %arg0, %c0_i32, %arg1 : i32, i32, i32
  }
  func.func @transform_1(%arg0: i32, %arg1: i32) -> (i32, i32, i32) {
    %c0_i32 = arith.constant 0 : i32
    %c0_i32_0 = arith.constant 0 : i32
    %c0_i32_1 = arith.constant 0 : i32
    return %arg0, %c0_i32, %c0_i32_0 : i32, i32, i32
  }
}

</mosaic_0001>

<bundles_post_ra>
// kernel: cam_module.3
= control target key start
LH: loop header
LB: loop body
LE: loop exit
PB: predicated region body
PF: predicated region fallthrough
CT: control target
= control target key end

     0   :  { %s514_s14 = smov 0   ;;  %s516_s15 = smov 0   ;;  %s550_s0 = inlined_call_operand.<no memory space> [shape: f32[1], index: 0, kind: input, shape index: {}]   ;;  %s551_s1 = inlined_call_operand.vmem [shape: f32[2,4,4], index: 1, kind: input, shape index: {}]   ;;  %s552_s2 = inlined_call_operand.vmem [shape: f32[2,4,256], index: 2, kind: input, shape index: {}, may-alias: {2,3}]   ;;  %s553_s3 = inlined_call_operand.vmem [shape: f32[2,4,256], index: 3, kind: output, shape index: {}, may-alias: {2,3}]  }
   0x1   :  { %8 = sst [smem:[#allocation2]] %s550_s0  ;;  %s518_s16 = smov 0  }
   0x2 LB: > { %s26_s0 = sadd.s32 1, %s484_s15  ;;  %p427_p0 = scmp.ge.s32.totalorder %s488_s16, 1  ;;  %s488_s16 = sphi %s518_s16, %s14_s16   ;;  %s484_s15 = sphi %s516_s15, %s555_s15   ;;  %s480_s14 = sphi %s514_s14, %s554_s14  }
   0x3   : > { %p28_p1 = scmp.ge.s32.totalorder %s26_s0, 2  ;;  %p168_p2 = scmp.lt.s32.totalorder %s488_s16, 3 }
   0x5   : > { %s557_s0 = smov (%p28_p1, %s26_s0), 0  ;;  %p169_p3 = pnand %p427_p0, %p168_p2 }
   0x6   : > { %p204_p4 = scmp.lt.s32.totalorder (!%p169_p3), %s480_s14, 1  ;;  %s312_s25 = sld [smem:[#allocation2]] (!%p169_p3) }
   0x7   : > { %172 = sbr.rel (%p169_p3) target bundleno = 222 (0xde), region = 32 }
   0xc   : > { %v490_v0 = vmov 0.0   ;;  %s559_s14 = smov (!%p204_p4, %s480_s14), 1  ;;  %vm236_vm0 = vcmask 1043456   ;;  %vm232_vm1 = vcmask 31744   ;;  %v313_v4 = vstv %s312_s25 }
   0xd   : > { %305 = vmatprep.mubr.f32.mxu0 %v490_v0  ;;  %s438_s17 = sshll.u32 %s559_s14, 3  ;;  %s428_s18 = sshll.u32 %s559_s14, 2 }
   0xe   : > { %s216_s21 = scalar_lea.vmem %s552_s2, %s438_s17  ;;  %s207_s24 = scalar_lea.vmem %s551_s1, %s428_s18 }
   0xf   : > { %v228_v1 = vld [vmem:[%s216_s21] sm:$0xff]  ;;  %s226_s28 = scalar_lea.vmem %s553_s3, %s438_s17 }
  0x10   : > { %v231_v2 = vcombine.high %v228_v1, %v228_v1  ;;  %v229_v3 = vld [vmem:[%s207_s24] sm:$0xf] }
  0x12   : > { %433 = vmatprep.subr.msk.mxu0 %vm236_vm0, %v231_v2 }
  0x13   : > { %434 = vmatpush1.msk.msra.mxu0 %vm236_vm0, %v228_v1 }
  0x14   : > { %435 = vmatmul.mubr.msk.f32.vlgmr.msra.gmra.mxu0 %vm232_vm1, %v229_v3 }
  0xd4   : > { %v307_v5 = vpop.f32.mrf.mxu0 }
  0xd5   : > { %v314_v6 = vmul.f32 %v313_v4, %v307_v5 }
  0xd6   : > { %v309_v7 = vpop.f32.mrf.mxu0 }
  0xd7   : > { %v315_v8 = vmul.f32 %v313_v4, %v309_v7  ;;  %v317_v9 = vadd.f32 %v314_v6, %v228_v1 }
  0xd9   : > { %v318_v10 = vadd.f32 %v315_v8, %v231_v2 }
  0xdb   : > { %v321_v11 = vcombine.low %v317_v9, %v318_v10 }
  0xdd   : > { %323 = vst [vmem:[%s226_s28] sm:$0xff] %v321_v11 }
  0xde PF: > { %s14_s16 = sadd.s32 1, %s488_s16   ;;  %s554_s14 = smov %s484_s15 }
  0xdf   : > { %p11_p5 = scmp.ge.s32.totalorder %s14_s16, 4   ;;  %s555_s15 = smov %s557_s0 }
  0xe1   :  { %13 = sbr.rel (!%p11_p5) target bundleno = 2 (0x2), region = 65 }

// kernel: cam_module.2
= control target key start
LH: loop header
LB: loop body
LE: loop exit
PB: predicated region body
PF: predicated region fallthrough
CT: control target
= control target key end

     0   :  { %s386_s6 = smov 0   ;;  %s388_s7 = smov 0   ;;  %s424_s0 = inlined_call_operand.vmem [shape: f32[2,4,256], index: 0, kind: input, shape index: {}]   ;;  %s425_s1 = inlined_call_operand.vmem [shape: f32[2,4,4], index: 1, kind: output, shape index: {}]  }
   0x1   :  { %s390_s8 = smov 0  }
   0x2 LB: > { %s23_s9 = sadd.s32 1, %s369_s7  ;;  %p314_p0 = scmp.ge.s32.totalorder %s373_s8, 1  ;;  %s373_s8 = sphi %s390_s8, %s11_s8   ;;  %s369_s7 = sphi %s388_s7, %s427_s7   ;;  %s365_s6 = sphi %s386_s6, %s426_s6  }
   0x3   : > { %p25_p1 = scmp.ge.s32.totalorder %s23_s9, 2  ;;  %p106_p2 = scmp.lt.s32.totalorder %s373_s8, 3 }
   0x5   : > { %s429_s9 = smov (%p25_p1, %s23_s9), 0  ;;  %p107_p3 = pnand %p314_p0, %p106_p2 }
   0x6   : > { %p130_p4 = scmp.lt.s32.totalorder (!%p107_p3), %s365_s6, 1 }
   0x7   : > { %110 = sbr.rel (%p107_p3) target bundleno = 538 (0x21a), region = 24 }
   0xc   : > { %s431_s6 = smov (!%p130_p4, %s365_s6), 1  ;;  %vm147_vm0 = vcmask 27648   ;;  %v375_v1 = vmov 0.0  }
   0xd   : > { %s320_s10 = sshll.u32 %s431_s6, 3  ;;  %s317_s11 = sshll.u32 %s431_s6, 2 }
   0xe   : > { %s137_s14 = scalar_lea.vmem %s424_s0, %s320_s10  ;;  %s142_s17 = scalar_lea.vmem %s425_s1, %s317_s11 }
   0xf   : > { %v149_v0 = vld [vmem:[%s137_s14] sm:$0xff]  ;;  %148 = vst.msk [vmem:[%s142_s17] sm:$0xf] %vm147_vm0, %v375_v1 }
  0x10   : > { %v152_v2 = vcombine.high %v149_v0, %v149_v0 }
  0x12   : > { %184 = vmatprep.subr.mxu0 %v152_v2  ;;  %218 = vmatprep.mubr.f32.mxu0 %v152_v2 }
  0x13   : > { %185 = vmatpush1.xpose.msra.mxu0 %v149_v0 }
  0x16   : > { %219 = vmatmul.mubr.f32.vlgmr.msra.gmra.mxu0 %v149_v0  ;;  %v150_v3 = vld [vmem:[%s142_s17] sm:$0xf] }
  0xd6   : > { %v220_v4 = vpop.f32.mrf.mxu0 }
  0xd7   : > { %v224_v5 = vadd.f32 %v220_v4, %v150_v3 }
  0xd8   : > { %v222_v6 = vpop.f32.mrf.mxu0 }
  0xd9   : > { %226 = vst.msk [vmem:[%s142_s17] sm:$0xf] %vm147_vm0, %v224_v5 }
  0xe0   : > { %v230_v7 = vld [vmem:[%s142_s17] sm:$0xf] }
  0xe1   : > { %v231_v8 = vsel %vm147_vm0, %v230_v7, inf }
  0xe2   : > { %232 = vmin.xlane.f32.xlu0 %v231_v8 }
 0x16b   : > { %v233_v9 = vpop.xlane.xlu0 %232 }
 0x16c   : > { %v234_v10 = vsub.f32 %v233_v9, %v230_v7 }
 0x16e   : > { %v235_v11 = vmul.f32 1.442695, %v234_v10 }
 0x170   : > { %347 = vpow2.f32 %v235_v11 }
 0x17d   : > { %v348_v12 = vpop.eup %347 }
 0x17e   : > { %v237_v13 = vsel %vm147_vm0, %v348_v12, 0.0 }
 0x17f   : > { %238 = vadd.xlane.f32.xlu0 %v237_v13 }
 0x208   : > { %v239_v14 = vpop.xlane.xlu0 %238 }
 0x209   : > { %349 = vrcp.f32 %v239_v14 }
 0x216   : > { %v350_v15 = vpop.eup %349 }
 0x217   : > { %v241_v16 = vmul.f32 %v350_v15, %v348_v12 }
 0x219   : > { %242 = vst.msk [vmem:[%s142_s17] sm:$0xf] %vm147_vm0, %v241_v16 }
 0x21a PF: > { %s11_s8 = sadd.s32 1, %s373_s8   ;;  %s426_s6 = smov %s369_s7 }
 0x21b   : > { %p8_p5 = scmp.ge.s32.totalorder %s11_s8, 4   ;;  %s427_s7 = smov %s429_s9 }
 0x21d   :  { %10 = sbr.rel (!%p8_p5) target bundleno = 2 (0x2), region = 62 }

</bundles_post_ra>
